<compile_context>
chip_gen: v7x
topology: tpu7x:2x2x1
jax: 0.10.0
libtpu: 0.0.40
codegen_flags: <defaults>
</compile_context>

<pallas_src>
import jax
import jax.numpy as jnp
from jax.experimental import pallas as pl
from jax.experimental.pallas import tpu as pltpu

NODES1 = 32          # hidden width ("nodes1" in the module); must be <= 128
SLAB_ROWS = 8        # one vreg: (8, 128) f32 = 4 KiB
SLAB_LANES = 128


def one_layer_kernel(x_ref, slab_ref, o_ref):
    # x_ref:    SMEM (2,)      f32   -> the two scalars actually used
    # slab_ref: VMEM (8, 128)  f32   -> packed parameters (one vreg)
    # o_ref:    VMEM (1, 1)    f32
    x0 = x_ref[0]
    x1 = x_ref[1]

    # Three multi-row loads instead of seven single-sublane ones.
    w_sin = slab_ref[0:2, :]   # row 0: weights * sin(x0), row 1: weights * sin(x1)
    w_cos = slab_ref[2:4, :]   # row 0: weights * cos(x0), row 1: weights * cos(x1)
    tail  = slab_ref[4:7, :]   # rows: b1, w2^T (lane-dense), b2 (lane 0 only)
    b1  = tail[0:1, :]
    w2t = tail[1:2, :]
    b2r = tail[2:3, :]

    # Broadcast x0 / x1 onto sublanes 0 / 1 of one (2,128) value, then run
    # sin and cos each ONCE over both rows (3 EUP pushes total incl. tanh).
    row = jax.lax.broadcasted_iota(jnp.int32, (2, SLAB_LANES), 0)
    xv = jnp.where(row == 0, x0, x1).astype(jnp.float32)        # (2,128)
    s = jnp.sin(xv)
    c = jnp.cos(xv)

    # lin1 + tanh: two (2,128) VPU multiplies, one 2-row sublane (XLU) reduce,
    # bias add, tanh. Padded lanes stay 0 (tanh(0)=0) and are killed by w2t=0.
    pre = jnp.sum(s * w_sin + c * w_cos, axis=0, keepdims=True) + b1   # (1,128)
    h = jnp.tanh(pre)

    # lin2: lane-dense multiply + XLU cross-lane reduce; b2 (zero-padded row,
    # value only at lane 0) folds into the same reduce.
    o_ref[...] = jnp.sum(h * w2t + b2r, axis=-1, keepdims=True)        # (1,1)


def pack_params(w1, b1, w2, b2, nodes1=NODES1):
    """Pack params into one (8,128) f32 slab. Do this ONCE, not per forward.

    w1: (4, nodes1) with rows ordered [sin(x0), cos(x0), sin(x1), cos(x1)]
    b1: (nodes1,)   w2: (nodes1, 1)   b2: (1,)
    Slab layout: rows 0-1 = sin-weights (x0, x1), rows 2-3 = cos-weights
    (x0, x1), row 4 = b1, row 5 = w2^T, row 6 = b2 at lane 0, row 7 unused.
    """
    assert nodes1 <= SLAB_LANES
    w1 = w1.astype(jnp.float32)
    slab = jnp.zeros((SLAB_ROWS, SLAB_LANES), jnp.float32)
    slab = slab.at[0, :nodes1].set(w1[0])   # * sin(x0)
    slab = slab.at[1, :nodes1].set(w1[2])   # * sin(x1)
    slab = slab.at[2, :nodes1].set(w1[1])   # * cos(x0)
    slab = slab.at[3, :nodes1].set(w1[3])   # * cos(x1)
    slab = slab.at[4, :nodes1].set(b1.reshape(-1).astype(jnp.float32))
    slab = slab.at[5, :nodes1].set(w2.reshape(-1).astype(jnp.float32))
    slab = slab.at[6, 0].set(b2.reshape(())[()].astype(jnp.float32))
    return slab


def _pallas_forward(x_scalars, slab):
    return pl.pallas_call(
        one_layer_kernel,
        out_shape=jax.ShapeDtypeStruct((1, 1), jnp.float32),
        in_specs=[
            pl.BlockSpec(memory_space=pltpu.MemorySpace.SMEM),   # x scalars
            pl.BlockSpec(memory_space=pltpu.MemorySpace.VMEM),   # parameter slab
        ],
        out_specs=pl.BlockSpec(memory_space=pltpu.MemorySpace.VMEM),
        cost_estimate=pl.CostEstimate(
            flops=2048,             # 2x(2,128) FMAs + sublane reduce + lane reduce
            transcendentals=640,    # sin/cos over (2,128) + tanh over (1,128)
            bytes_accessed=4 * (2 + SLAB_ROWS * SLAB_LANES + 1),
        ),
    )(x_scalars, slab)


@jax.jit
def one_layer_from_slab(x, slab):
    """Hot-path forward: takes the pre-packed slab, no per-call packing."""
    x_scalars = x[0, 0:2].astype(jnp.float32)   # only x[0][0], x[0][1] are used
    return _pallas_forward(x_scalars, slab).reshape(1)   # torch returns shape (1,)


def one_layer(x, w1, b1, w2, b2):
    """Convenience one-off entry point (packs the slab; do NOT use per-step)."""
    return one_layer_from_slab(x, pack_params(w1, b1, w2, b2))


def one_layer_ref(x, w1, b1, w2, b2):
    feat = jnp.stack(
        [jnp.sin(x[0, 0]), jnp.cos(x[0, 0]), jnp.sin(x[0, 1]), jnp.cos(x[0, 1])]
    ).reshape(1, 4).astype(jnp.float32)
    h = jnp.tanh(feat @ w1 + b1[None, :])
    return (h @ w2 + b2[None, :]).reshape(1)


if __name__ == "__main__":
    key = jax.random.PRNGKey(0)
    k1, k2, k3, k4, kx = jax.random.split(key, 5)

    # deterministic init matching nn.Linear's uniform(-1/sqrt(fan_in), +...)
    bound1 = 1.0 / jnp.sqrt(4.0)
    w1 = jax.random.uniform(k1, (4, NODES1), jnp.float32, -bound1, bound1)
    b1 = jax.random.uniform(k2, (NODES1,), jnp.float32, -bound1, bound1)
    bound2 = 1.0 / jnp.sqrt(float(NODES1))
    w2 = jax.random.uniform(k3, (NODES1, 1), jnp.float32, -bound2, bound2)
    b2 = jax.random.uniform(k4, (1,), jnp.float32, -bound2, bound2)

    # input: only x[0][0] and x[0][1] are used by the forward
    x = jax.random.normal(kx, (1, 2), jnp.float32)

    # Pack the parameter slab ONCE (outside the per-call path), then run.
    slab = jax.block_until_ready(pack_params(w1, b1, w2, b2))

    y = one_layer_from_slab(x, slab)
    jax.block_until_ready(y)

    y_ref = one_layer_ref(x, w1, b1, w2, b2)
    assert jnp.allclose(y, y_ref, atol=2e-5, rtol=2e-5), (y, y_ref)

    print("KERNEL_OK")
</pallas_src>

<mosaic_0001>
module attributes {stable_mosaic.version = 11 : i64} {
  func.func @one_layer_kernel(%arg0: memref<2xf32, #tpu.memory_space<smem>>, %arg1: memref<8x128xf32, #tpu.memory_space<vmem>>, %arg2: memref<1x1xf32, #tpu.memory_space<vmem>>) attributes {dimension_semantics = [], scalar_prefetch = 0 : i64, scratch_operands = 0 : i64, tpu.core_type = #tpu.core_type<tc>} {
    %c0 = arith.constant 0 : index
    %0 = memref.load %arg0[%c0] : memref<2xf32, #tpu.memory_space<smem>>
    %c1 = arith.constant 1 : index
    %1 = memref.load %arg0[%c1] : memref<2xf32, #tpu.memory_space<smem>>
    %c0_0 = arith.constant 0 : index
    %c0_1 = arith.constant 0 : index
    %2 = vector.load %arg1[%c0_0, %c0_1] : memref<8x128xf32, #tpu.memory_space<vmem>>, vector<2x128xf32>
    %c2 = arith.constant 2 : index
    %c0_2 = arith.constant 0 : index
    %3 = vector.load %arg1[%c2, %c0_2] : memref<8x128xf32, #tpu.memory_space<vmem>>, vector<2x128xf32>
    %c4 = arith.constant 4 : index
    %c0_3 = arith.constant 0 : index
    %4 = vector.load %arg1[%c4, %c0_3] : memref<8x128xf32, #tpu.memory_space<vmem>>, vector<3x128xf32>
    %5 = vector.extract_strided_slice %4 {offsets = [0, 0], sizes = [1, 128], strides = [1, 1]} : vector<3x128xf32> to vector<1x128xf32>
    %6 = vector.extract_strided_slice %4 {offsets = [1, 0], sizes = [1, 128], strides = [1, 1]} : vector<3x128xf32> to vector<1x128xf32>
    %7 = vector.extract_strided_slice %4 {offsets = [2, 0], sizes = [1, 128], strides = [1, 1]} : vector<3x128xf32> to vector<1x128xf32>
    %8 = tpu.iota {dimensions = array<i32: 0>} : vector<2x128xi32>
    %c0_i32 = arith.constant 0 : i32
    %9 = vector.broadcast %c0_i32 : i32 to vector<2x128xi32>
    %10 = arith.cmpi eq, %8, %9 : vector<2x128xi32>
    %11 = vector.broadcast %0 : f32 to vector<2x128xf32>
    %12 = vector.broadcast %1 : f32 to vector<2x128xf32>
    %13 = arith.select %10, %11, %12 : vector<2x128xi1>, vector<2x128xf32>
    %14 = math.sin %13 : vector<2x128xf32>
    %15 = math.cos %13 : vector<2x128xf32>
    %16 = arith.mulf %14, %2 : vector<2x128xf32>
    %17 = arith.mulf %15, %3 : vector<2x128xf32>
    %18 = arith.addf %16, %17 : vector<2x128xf32>
    %cst = arith.constant dense<0.000000e+00> : vector<128xf32>
    %19 = vector.multi_reduction <add>, %18, %cst [0] : vector<2x128xf32> to vector<128xf32>
    %20 = vector.shape_cast %19 : vector<128xf32> to vector<1x128xf32>
    %21 = arith.addf %20, %5 : vector<1x128xf32>
    %22 = math.tanh %21 : vector<1x128xf32>
    %23 = arith.mulf %22, %6 : vector<1x128xf32>
    %24 = arith.addf %23, %7 : vector<1x128xf32>
    %cst_4 = arith.constant dense<0.000000e+00> : vector<1xf32>
    %25 = vector.multi_reduction <add>, %24, %cst_4 [1] : vector<1x128xf32> to vector<1xf32>
    %26 = vector.shape_cast %25 : vector<1xf32> to vector<1x1xf32>
    %c0_5 = arith.constant 0 : index
    %c0_6 = arith.constant 0 : index
    %27 = vector.load %arg2[%c0_5, %c0_6] : memref<1x1xf32, #tpu.memory_space<vmem>>, vector<1x1xf32>
    tpu.vector_store %arg2[%c0_5, %c0_6], %26 {strides = array<i32>} : memref<1x1xf32, #tpu.memory_space<vmem>>, vector<1x1xf32>,
    return
  }
}

</mosaic_0001>

<bundles_post_ra>
// kernel: one_layer_from_slab.1
= control target key start
LH: loop header
LB: loop body
LE: loop exit
PB: predicated region body
PF: predicated region fallthrough
CT: control target
= control target key end

     0   :  { %7 = vsyncpa [#allocation5], 0  ;;  %s459_s0 = inlined_call_operand.vmem [shape: f32[2], index: 0, kind: input, shape index: {}]   ;;  %s460_s1 = inlined_call_operand.hbm [shape: f32[8,128], index: 1, kind: input, shape index: {}]   ;;  %s461_s2 = inlined_call_operand.hbm [shape: f32[1,1], index: 2, kind: output, shape index: {}]  }
   0x1   :  { %8 = vsyncpa [#allocation3], 0 }
   0x2   :  { %9 = vsyncpa [#allocation4], 0  ;;  %s16_s11 = sshll.u32 %s459_s0, 4  ;;  %s17_s11 = int_to_ptr.vmem [resolvable:$true] %s16_s11 }
   0x3   :  { %s325_s12 = scalar_lea.vmem %s17_s11, 16  ;;  %p330_p1 = scmp.lt.s32.totalorder %s17_s11, %s17_s11 }
   0x4   :  { %p326_p0 = scmp.ne.s32.totalorder %s17_s11, %s325_s12  ;;  %p331_p2 = scmp.lt.s32.totalorder %s325_s12, %s325_s12 }
   0x6   :  { %p332_p3 = por %p331_p2, %p330_p1 }
   0x8   :  { %p333_p4 = pnand %p332_p3, %p326_p0 }
   0xa   :  { %336 = shalt.err (!%p333_p4)
}
   0xb   :  { %s387_s13 = smov [#allocation2]   ;;  %s388_s14 = smov [#allocation6]  }
   0xc   :  { %19 = dma.vmem_to_smem %s17_s11, 16, %s387_s13, [#allocation5]  }
   0xd   :  { %s26_s15 = sshll.u32 %s388_s14, 4  ;;  %s337_s18 = scalar_lea.hbm %s460_s1, 128  ;;  %s27_s15 = int_to_ptr.vmem [resolvable:$true] %s26_s15 }
   0xe   :  { %p338_p5 = scmp.ne.s32.totalorder %s460_s1, %s337_s18  ;;  %p341_p6 = scmp.lt.u32.totalorder %s337_s18, %s460_s1 }
  0x10   :  { %p343_p7 = pnand %p341_p6, %p338_p5 }
  0x12   :  { %346 = shalt.err (!%p343_p7)
}
  0x13   :  { %s347_s22 = scalar_lea.vmem %s27_s15, 128  ;;  %p352_p9 = scmp.lt.s32.totalorder %s27_s15, %s27_s15 }
  0x14   :  { %p348_p8 = scmp.ne.s32.totalorder %s27_s15, %s347_s22  ;;  %p353_p10 = scmp.lt.s32.totalorder %s347_s22, %s347_s22 }
  0x16   :  { %p354_p11 = por %p353_p10, %p352_p9 }
  0x18   :  { %p355_p12 = pnand %p354_p11, %p348_p8 }
  0x1a   :  { %358 = shalt.err (!%p355_p12)
}
  0x1b   :  { %29 = dma.hbm_to_vmem [thread:$0]  %s460_s1, 128, %s27_s15, [#allocation3]  }
  0x1c   :  { %381 = dma.done.wait [#allocation5], 16  }
  0x1d   :  { %382 = vsyncadd [#allocation5], 4294967280 }
  0x1e   :  { %383 = dma.done.wait [#allocation3], 128  }
  0x1f   :  { %384 = vsyncadd [#allocation3], 4294967168 }
  0x20   :  { %36 = sfence }
  0x21   :  { %s37_s25 = sld [smem:[#allocation2]]  ;;  %s297_s26 = sld [smem:[#allocation2 + $0x1]]  ;;  %v42_v0 = vlaneseq  ;;  %v389_v16 = vmov 683565275   ;;  %v390_v18 = vmov 2475754826  }
  0x22   :  { %v391_v20 = vmov 2131351028   ;;  %v392_v22 = vmov 2102212464   ;;  %v393_v24 = vmov 920167782  }
  0x23   :  { %v43_v1 = vshrl.u32 %v42_v0, 7  ;;  %v394_v31 = vmov 1326507024   ;;  %s395_s1 = smov [#allocation7]  }
  0x24   :  { %s287_s27 = sshll.u32 %s395_s1, 4  ;;  %s288_s27 = int_to_ptr.vmem [resolvable:$true] %s287_s27 }
  0x25   :  { %vm44_vm0 = vcmp.eq.s32.totalorder %v43_v1, 0  ;;  %s359_s28 = scalar_lea.vmem %s288_s27, 16  ;;  %s363_s29 = scalar_lea.vmem %s288_s27, 32 }
  0x26   :  { %p360_p13 = scmp.ne.s32.totalorder %s288_s27, %s359_s28  ;;  %p364_p0 = scmp.lt.s32.totalorder %s288_s27, %s288_s27 }
  0x27   :  { %v45_v2 = vstv %s37_s25  ;;  %v46_v3 = vstv %s297_s26  ;;  %p365_p1 = scmp.lt.s32.totalorder %s363_s29, %s359_s28 }
  0x28   :  { %v426_v4 = vsel %vm44_vm0, %v45_v2, %v46_v3 }
  0x29   :  { %v51_v5 = vand.u32 2139095040, %v426_v4  ;;  %v48_v7 = vand.u32 2147483647, %v426_v4  ;;  %vm50_vm8 = vcmp.lt.s32.totalorder %v426_v4, 0  ;;  %vm140_vm0 = vweird.f32 %v426_v4  ;;  %p366_p2 = por %p365_p1, %p364_p0 }
  0x2b   :  { %v52_v6 = vshrl.u32 %v51_v5, 23  ;;  %v55_v10 = vand.u32 8388607, %v48_v7  ;;  %vm49_vm9 = vcmp.le.f32.partialorder %v48_v7, 0.7853982  ;;  %p367_p3 = pnand %p366_p2, %p360_p13 }
  0x2d   :  { %v298_v8 = vadd.s32 4294967169, %v52_v6  ;;  %v56_v13 = vor.u32 8388608, %v55_v10 }
  0x2f   :  { %v58_v9 = vadd.s32 1, %v298_v8  ;;  %v96_v33 = vshll.u32 %v56_v13, 8 }
  0x31   :  { %vm59_vm1 = vcmp.gt.s32.totalorder %v58_v9, 0 }
  0x32   :  { %v60_v11 = vsel %vm59_vm1, %v58_v9, 0  ;;  %vm258_vm1 = vcmask 1041408  }
  0x33   :  { %v62_v12 = vand.u32 31, %v60_v11  ;;  %v61_v14 = vshrl.u32 %v60_v11, 5 }
  0x35   :  { %v63_v15 = vsub.s32 32, %v62_v12  ;;  %v65_v17 = vshll.u32 %v389_v16, %v62_v12  ;;  %v68_v19 = vshll.u32 %v390_v18, %v62_v12  ;;  %v71_v21 = vshll.u32 %v391_v20, %v62_v12 }
  0x36   :  { %v74_v23 = vshll.u32 %v392_v22, %v62_v12  ;;  %v77_v25 = vshll.u32 %v393_v24, %v62_v12  ;;  %vm80_vm2 = vcmp.lt.s32.totalorder %v61_v14, 1  ;;  %vm83_vm3 = vcmp.lt.s32.totalorder %v61_v14, 4 }
  0x37   :  { %v64_v26 = vshrl.u32 %v389_v16, %v63_v15  ;;  %v66_v27 = vshrl.u32 %v390_v18, %v63_v15  ;;  %v69_v28 = vshrl.u32 %v391_v20, %v63_v15  ;;  %v72_v29 = vshrl.u32 %v392_v22, %v63_v15 }
  0x38   :  { %v75_v30 = vshrl.u32 %v393_v24, %v63_v15  ;;  %v78_v32 = vshrl.u32 %v394_v31, %v63_v15  ;;  %vm81_vm4 = vcmp.lt.s32.totalorder %v61_v14, 2  ;;  %vm82_vm5 = vcmp.lt.s32.totalorder %v61_v14, 3 }
  0x39   :  { %v67_v34 = vor.u32 %v66_v27, %v65_v17  ;;  %v70_v35 = vor.u32 %v69_v28, %v68_v19  ;;  %v73_v36 = vor.u32 %v72_v29, %v71_v21 }
  0x3a   :  { %v76_v37 = vor.u32 %v75_v30, %v74_v23  ;;  %v79_v38 = vor.u32 %v78_v32, %v77_v25  ;;  %v39_v32 = vld [vmem:[#allocation6] sm:$0x3] }
  0x3b   :  { %v84_v39 = vsel %vm80_vm2, %v64_v26, %v67_v34  ;;  %v85_v40 = vsel %vm83_vm3, %v73_v36, 2102212464  ;;  %v88_v41 = vsel %vm80_vm2, %v67_v34, %v70_v35  ;;  %v92_v42 = vsel %vm80_vm2, %v70_v35, %v73_v36 }
  0x3c   :  { %v86_v43 = vsel %vm82_vm5, %v70_v35, %v85_v40  ;;  %v89_v44 = vsel %vm83_vm3, %v76_v37, 920167782  ;;  %v93_v45 = vsel %vm83_vm3, %v79_v38, 1326507024  ;;  %vm275_vm2 = vcmask 1040384  }
  0x3d   :  { %v90_v46 = vsel %vm82_vm5, %v73_v36, %v89_v44  ;;  %v94_v47 = vsel %vm82_vm5, %v76_v37, %v93_v45  ;;  %v87_v48 = vsel %vm81_vm4, %v84_v39, %v86_v43  ;;  %vm279_vm3 = vcmask 0  }
  0x3e   :  { %v91_v49 = vsel %vm81_vm4, %v88_v41, %v90_v46  ;;  %v95_v50 = vsel %vm81_vm4, %v92_v42, %v94_v47  ;;  %v103_v55 = vmul.u32 %v96_v33, %v87_v48  ;;  %v41_v48 = vld [vmem:[#allocation6 + $0x4] sm:$0x7] }
  0x3f   :  { %v432_v51 = vmul.u32.u64.low %v96_v33, %v95_v50  ;;  %v433_v52 = vmul.u32.u64.high %v96_v33, %v95_v50, %v432_v51  ;;  %v435_v53 = vmul.u32.u64.low %v96_v33, %v91_v49  ;;  %v436_v54 = vmul.u32.u64.high %v96_v33, %v91_v49, %v435_v53  ;;  %v40_v33 = vld [vmem:[#allocation6 + $0x2] sm:$0x3] }
  0x40   :  { %v269_v51 = vrot.slane %v41_v48, 1 }
  0x41   :  { %vm105_vm6 = vc.u32 %v433_v52, %v435_v53  ;;  %v106_v56 = vadd.s32 1, %v436_v54  ;;  %v104_v3 = vadd.s32 %v435_v53, %v433_v52  ;;  %v272_v52 = vrot.slane %v41_v48, 2 }
  0x43   :  { %v107_v57 = vsel %vm105_vm6, %v106_v56, %v436_v54 }
  0x44   :  { %v108_v58 = vadd.s32 %v107_v57, %v103_v55 }
  0x46   :  { %v109_v59 = vadd.s32 536870912, %v108_v58 }
  0x48   :  { %v110_v60 = vshrl.u32 %v109_v59, 30 }
  0x4a   :  { %v111_v61 = vshll.u32 %v110_v60, 30  ;;  %v134_v17 = vsub.s32 4, %v110_v60 }
  0x4c   :  { %v112_v62 = vsub.s32 %v108_v58, %v111_v61  ;;  %v135_v20 = vsel %vm50_vm8, %v134_v17, %v110_v60 }
  0x4d   :  { %v137_v23 = vsel %vm49_vm9, 0, %v135_v20 }
  0x4e   :  { %v114_v63 = vsub.s32 0, %v112_v62  ;;  %v141_v24 = vadd.s32 3, %v137_v23  ;;  %v245_v26 = vand.u32 3, %v137_v23 }
  0x50   :  { %v299_v0 = vmin.u32 %v114_v63, %v112_v62  ;;  %v142_v25 = vand.u32 3, %v141_v24  ;;  %vm250_vm11 = vcmp.eq.s32.totalorder %v245_v26, 2  ;;  %vm247_vm13 = vcmp.eq.s32.totalorder %v245_v26, 0 }
  0x51   :  { %vm246_vm15 = vcmp.lt.s32.totalorder %v245_v26, 2 }
  0x52   :  { %v116_v1 = vclz %v299_v0  ;;  %vm147_vm10 = vcmp.eq.s32.totalorder %v142_v25, 2  ;;  %vm144_vm12 = vcmp.eq.s32.totalorder %v142_v25, 0  ;;  %vm143_vm14 = vcmp.lt.s32.totalorder %v142_v25, 2 }
  0x54   :  { %v300_v2 = vadd.s32 4294967294, %v116_v1 }
  0x56   :  { %vm301_vm7 = vcmp.lt.s32.totalorder %v300_v2, 0 }
  0x57   :  { %v119_v5 = vsel %vm301_vm7, 0, %v300_v2 }
  0x58   :  { %v120_v6 = vsub.s32 32, %v119_v5  ;;  %v121_v8 = vshll.u32 %v112_v62, %v119_v5  ;;  %v124_v9 = vsub.s32 4294967266, %v119_v5 }
  0x5a   :  { %v122_v10 = vshrl.u32 %v104_v3, %v120_v6  ;;  %v125_v11 = vadd.s32 127, %v124_v9 }
  0x5c   :  { %v123_v12 = vor.u32 %v122_v10, %v121_v8  ;;  %v126_v13 = vshll.u32 %v125_v11, 23 }
  0x5e   :  { %v127_v14 = vor.u32 4788187, %v126_v13  ;;  %v130_v15 = vcvt.s32.f32 %v123_v12 }
  0x60   :  { %v128_v16 = vand.u32 2147483647, %v127_v14 }
  0x62   :  { %v131_v18 = vmul.f32 %v130_v15, %v128_v16 }
  0x64   :  { %v132_v19 = vxor.u32 2147483648, %v131_v18 }
  0x66   :  { %v133_v21 = vsel %vm50_vm8, %v132_v19, %v131_v18 }
  0x67   :  { %v136_v22 = vsel %vm49_vm9, %v426_v4, %v133_v21 }
  0x68   :  { %319 = vcosq.f32 %v136_v22 }
  0x69   :  { %321 = vsinq.f32 %v136_v22 }
  0x72   :  { %v320_v27 = vpop.eup %319 }
  0x73   :  { %v322_v28 = vpop.eup %321  ;;  %v148_v29 = vxor.u32 2147483648, %v320_v27 }
  0x74   :  { %v145_v7 = vxor.u32 2147483648, %v322_v28 }
  0x75   :  { %v149_v30 = vsel %vm147_vm10, %v148_v29, %v322_v28  ;;  %v252_v31 = vsel %vm250_vm11, %v148_v29, %v322_v28 }
  0x76   :  { %v146_v34 = vsel %vm144_vm12, %v320_v27, %v145_v7  ;;  %v249_v35 = vsel %vm247_vm13, %v320_v27, %v145_v7 }
  0x77   :  { %v150_v36 = vsel %vm143_vm14, %v146_v34, %v149_v30  ;;  %v253_v37 = vsel %vm246_vm15, %v249_v35, %v252_v31 }
  0x78   :  { %v151_v38 = vsel %vm140_vm0, nan, %v150_v36  ;;  %v254_v39 = vsel %vm140_vm0, nan, %v253_v37 }
  0x79   :  { %v255_v40 = vmul.f32 %v151_v38, %v39_v32  ;;  %v256_v41 = vmul.f32 %v254_v39, %v40_v33 }
  0x7b   :  { %v257_v42 = vadd.f32 %v256_v41, %v255_v40 }
  0x7d   :  { %v259_v43 = vsel %vm258_vm1, %v257_v42, 0.0 }
  0x7e   :  { %v260_v44 = vrot.slane %v259_v43, 4 }
  0x80   :  { %v261_v45 = vadd.f32 %v260_v44, %v259_v43 }
  0x82   :  { %v262_v46 = vrot.slane %v261_v45, 2 }
  0x84   :  { %v263_v47 = vadd.f32 %v262_v46, %v261_v45 }
  0x86   :  { %v264_v4 = vrot.slane %v263_v47, 1 }
  0x88   :  { %v265_v49 = vadd.f32 %v264_v4, %v263_v47 }
  0x8a   :  { %v266_v50 = vadd.f32 %v265_v49, %v41_v48 }
  0x8c   :  { %323 = vtanh.f32 %v266_v50 }
  0x96   :  { %v324_v53 = vpop.eup %323 }
  0x97   :  { %v271_v54 = vmul.f32 %v324_v53, %v269_v51 }
  0x99   :  { %v274_v55 = vadd.f32 %v272_v52, %v271_v54 }
  0x9b   :  { %v276_v56 = vsel %vm275_vm2, %v274_v55, 0.0 }
  0x9c   :  { %277 = vadd.xlane.f32.xlu0 %v276_v56 }
 0x129   :  { %v278_v57 = vpop.xlane.xlu0 %277 }
 0x12a   :  { %280 = vst.msk [vmem:[#allocation7] sm:$0x1] %vm279_vm3, %v278_v57 }
 0x12b   :  { %370 = shalt.err (!%p367_p3)
}
 0x12c   :  { %s371_s4 = scalar_lea.hbm %s461_s2, 16 }
 0x12d   :  { %p372_p4 = scmp.ne.s32.totalorder %s461_s2, %s371_s4  ;;  %p375_p5 = scmp.lt.u32.totalorder %s371_s4, %s461_s2 }
 0x12f   :  { %p377_p6 = pnand %p375_p5, %p372_p4 }
 0x131   :  { %380 = shalt.err (!%p377_p6)
}
 0x132   :  { %290 = dma.vmem_to_hbm [thread:$0]  %s288_s27, 16, %s461_s2, [#allocation4]  }
 0x133   :  { %385 = dma.done.wait [#allocation4], 16  }
 0x134   :  { %386 = vsyncadd [#allocation4], 4294967280 }
 0x135   :  { %294 = vsyncpa [#allocation3], 1 }
 0x136   :  { %295 = vsyncpa [#allocation4], 1 }
 0x137   :  { %296 = vsyncpa [#allocation5], 1 }

</bundles_post_ra>
